<compile_context>
chip_gen: v7x
topology: tpu7x:2x2x1
jax: 0.10.0
libtpu: 0.0.40
codegen_flags: <defaults>
</compile_context>

<pallas_src>
import functools
import math

import jax
import jax.numpy as jnp
from jax.experimental import pallas as pl
from jax.experimental.pallas import tpu as pltpu

LANE = 128       # pad feature dims to one lane width -> lane-dense loads/stores
SUBLANE = 8      # pad the node dim to a sublane multiple
NUM_LAYERS = 3


# ----------------------------- fused kernel ---------------------------------

def fused_decoder_kernel(z_ref, adj_ref, w_ref, out_ref):
    """All three GNNLayers fused; z stays resident in VMEM/vregs throughout.

    Weights are pre-folded in the wrapper:
        Wc_l = (0.9*I + 0.1*W1_l) @ W_l        (exact; everything before tanh
                                                 is linear in x)
    so each layer is:
        support = tanh(x @ Wc_l)
        x       = adj @ support
    """
    adj = adj_ref[...]
    x = z_ref[...]
    for l in range(NUM_LAYERS):                      # statically unrolled
        support = jnp.tanh(
            jnp.dot(x, w_ref[l], preferred_element_type=jnp.float32))
        x = jnp.dot(adj, support, preferred_element_type=jnp.float32)
    out_ref[...] = x.astype(out_ref.dtype)


# ----------------------------- wrappers -------------------------------------

def _full_spec(shape):
    # Full-array block (single grid point) -> exempt from the (8,128) rule.
    return pl.BlockSpec(shape, lambda: (0,) * len(shape))


def _pad2d(a, rows, cols):
    r, c = a.shape
    return jnp.pad(a, ((0, rows - r), (0, cols - c)))


def prepare_decoder_params(params):
    """Fold the axpy + W1 matmul into the main weight and pack all layers into
    one lane-padded (3, 128, 128) array.

    Done ONCE at parameter setup (hoisted out of the forward path): removes
    three matmuls + all VPU scale/add work from the kernel and collapses six
    weight inputs into a single DMA.
    """
    packed = []
    for (w, w1) in params:
        in_f = w.shape[0]
        wc = (0.9 * jnp.eye(in_f, dtype=jnp.float32) + 0.1 * w1) @ w
        packed.append(_pad2d(wc, LANE, LANE))
    return jnp.stack(packed, axis=0)                 # (3, 128, 128)


@functools.partial(jax.jit, static_argnames=("n_input",))
def igae_decoder_forward(z_igae, adj, packed_w, *, n_input):
    """Fused IGAE_decoder forward. Returns z_hat of shape (N, n_input)."""
    n, _ = z_igae.shape
    n_pad = ((n + SUBLANE - 1) // SUBLANE) * SUBLANE
    f_pad = LANE

    # Zero padding is exact: padded feature columns stay exactly zero through
    # the folded matmuls and tanh(0)=0; padded adjacency rows/columns only
    # multiply zero rows of support.  Result is sliced back below.
    z_p = _pad2d(z_igae, n_pad, f_pad)
    adj_p = _pad2d(adj, n_pad, n_pad)

    # Advisory cost hint for XLA's scheduler (padded shapes = work performed).
    flops = NUM_LAYERS * 2 * (n_pad * f_pad * f_pad      # x @ Wc
                              + n_pad * n_pad * f_pad)   # adj @ support
    transcendentals = NUM_LAYERS * n_pad * f_pad         # tanh
    bytes_accessed = 4 * (2 * n_pad * f_pad              # z in, z_hat out
                          + n_pad * n_pad                # adj
                          + NUM_LAYERS * f_pad * f_pad)  # packed weights

    # Scoped VMEM sized to the resident footprint (x2 for buffering) + margin.
    vmem_limit = int(min(max(2 * bytes_accessed + (8 << 20), 16 << 20),
                         64 << 20))

    out_p = pl.pallas_call(
        fused_decoder_kernel,
        out_shape=jax.ShapeDtypeStruct((n_pad, f_pad), jnp.float32),
        in_specs=[_full_spec(z_p.shape),
                  _full_spec(adj_p.shape),
                  _full_spec(packed_w.shape)],
        out_specs=_full_spec((n_pad, f_pad)),
        cost_estimate=pl.CostEstimate(flops=flops,
                                      transcendentals=transcendentals,
                                      bytes_accessed=bytes_accessed),
        compiler_params=pltpu.CompilerParams(vmem_limit_bytes=vmem_limit),
    )(z_p, adj_p, packed_w)

    # TODO(synk): z_hat_adj = sigmoid(z_hat @ z_hat.T) is computed but never
    # returned by the PyTorch forward (dead work here); re-add it as a second
    # output if the full IGAE/DFCN training loss consumes it.
    return out_p[:n, :n_input]


# --------------------------- parameter setup --------------------------------

def xavier_uniform(key, fan_in, fan_out):
    # Matches torch.nn.init.xavier_uniform_ (gain=1).
    limit = math.sqrt(6.0 / (fan_in + fan_out))
    return jax.random.uniform(
        key, (fan_in, fan_out), dtype=jnp.float32, minval=-limit, maxval=limit
    )


def make_gnn_params(key, in_features, out_features):
    k_w, k_w1 = jax.random.split(key)
    weight = xavier_uniform(k_w, in_features, out_features)
    weight1 = xavier_uniform(k_w1, in_features, in_features)
    return weight, weight1


# ------------------------------- main ---------------------------------------

if __name__ == "__main__":
    # Small shapes consistent with the module.
    N = 8                 # number of graph nodes
    gae_n_dec_1 = 32
    gae_n_dec_2 = 16
    gae_n_dec_3 = 16
    n_input = 8

    key = jax.random.PRNGKey(0)
    k_z, k_adj, k_p4, k_p5, k_p6 = jax.random.split(key, 5)

    z_igae = jax.random.normal(k_z, (N, gae_n_dec_1), dtype=jnp.float32)

    # Symmetric row-normalized dense adjacency (stand-in for the sparse adj).
    a = jax.random.uniform(k_adj, (N, N), dtype=jnp.float32)
    a = 0.5 * (a + a.T) + jnp.eye(N, dtype=jnp.float32)
    adj = a / jnp.sum(a, axis=1, keepdims=True)

    params = (
        make_gnn_params(k_p4, gae_n_dec_1, gae_n_dec_2),
        make_gnn_params(k_p5, gae_n_dec_2, gae_n_dec_3),
        make_gnn_params(k_p6, gae_n_dec_3, n_input),
    )

    # Fold + pad + pack weights ONCE (hoisted out of the forward path).
    packed_w = prepare_decoder_params(params)
    jax.block_until_ready(packed_w)

    z_hat = igae_decoder_forward(z_igae, adj, packed_w, n_input=n_input)
    jax.block_until_ready(z_hat)

    # Cross-check against a pure-JAX reference of the ORIGINAL (unfolded) math.
    def ref_layer(x, w1, w, adj_):
        x1 = 0.9 * x + 0.1 * (x @ w1)
        return adj_ @ jnp.tanh(x1 @ w)

    r = z_igae
    for (w, w1) in params:
        r = ref_layer(r, w1, w, adj)
    assert z_hat.shape == (N, n_input)
    assert jnp.allclose(z_hat, r, atol=1e-4, rtol=1e-4), "mismatch vs reference"

    print("KERNEL_OK")
</pallas_src>

<mosaic_0001>
module attributes {stable_mosaic.version = 11 : i64} {
  func.func @fused_decoder_kernel(%arg0: memref<8x128xf32, #tpu.memory_space<vmem>>, %arg1: memref<8x8xf32, #tpu.memory_space<vmem>>, %arg2: memref<3x128x128xf32, #tpu.memory_space<vmem>>, %arg3: memref<8x128xf32, #tpu.memory_space<vmem>>) attributes {dimension_semantics = [], scalar_prefetch = 0 : i64, scratch_operands = 0 : i64, tpu.core_type = #tpu.core_type<tc>} {
    %c0 = arith.constant 0 : index
    %c0_0 = arith.constant 0 : index
    %0 = vector.load %arg1[%c0, %c0_0] : memref<8x8xf32, #tpu.memory_space<vmem>>, vector<8x8xf32>
    %c0_1 = arith.constant 0 : index
    %c0_2 = arith.constant 0 : index
    %1 = vector.load %arg0[%c0_1, %c0_2] : memref<8x128xf32, #tpu.memory_space<vmem>>, vector<8x128xf32>
    %c0_3 = arith.constant 0 : index
    %c0_4 = arith.constant 0 : index
    %c0_5 = arith.constant 0 : index
    %2 = vector.load %arg2[%c0_3, %c0_4, %c0_5] : memref<3x128x128xf32, #tpu.memory_space<vmem>>, vector<1x128x128xf32>
    %3 = vector.shape_cast %2 : vector<1x128x128xf32> to vector<128x128xf32>
    %cst = arith.constant dense<0.000000e+00> : vector<8x128xf32>
    %4 = tpu.matmul %1, %3, %cst {dimension_numbers = #tpu.dot_dimension_numbers<[1], [0], [0], [1], [0, 0, 1, 1], [], []>} : vector<8x128xf32>, vector<128x128xf32>, vector<8x128xf32> -> vector<8x128xf32>
    %5 = math.tanh %4 : vector<8x128xf32>
    %cst_6 = arith.constant dense<0.000000e+00> : vector<8x128xf32>
    %6 = tpu.matmul %0, %5, %cst_6 {dimension_numbers = #tpu.dot_dimension_numbers<[1], [0], [0], [1], [0, 0, 1, 1], [], []>} : vector<8x8xf32>, vector<8x128xf32>, vector<8x128xf32> -> vector<8x128xf32>
    %c1 = arith.constant 1 : index
    %c0_7 = arith.constant 0 : index
    %c0_8 = arith.constant 0 : index
    %7 = vector.load %arg2[%c1, %c0_7, %c0_8] : memref<3x128x128xf32, #tpu.memory_space<vmem>>, vector<1x128x128xf32>
    %8 = vector.shape_cast %7 : vector<1x128x128xf32> to vector<128x128xf32>
    %cst_9 = arith.constant dense<0.000000e+00> : vector<8x128xf32>
    %9 = tpu.matmul %6, %8, %cst_9 {dimension_numbers = #tpu.dot_dimension_numbers<[1], [0], [0], [1], [0, 0, 1, 1], [], []>} : vector<8x128xf32>, vector<128x128xf32>, vector<8x128xf32> -> vector<8x128xf32>
    %10 = math.tanh %9 : vector<8x128xf32>
    %cst_10 = arith.constant dense<0.000000e+00> : vector<8x128xf32>
    %11 = tpu.matmul %0, %10, %cst_10 {dimension_numbers = #tpu.dot_dimension_numbers<[1], [0], [0], [1], [0, 0, 1, 1], [], []>} : vector<8x8xf32>, vector<8x128xf32>, vector<8x128xf32> -> vector<8x128xf32>
    %c2 = arith.constant 2 : index
    %c0_11 = arith.constant 0 : index
    %c0_12 = arith.constant 0 : index
    %12 = vector.load %arg2[%c2, %c0_11, %c0_12] : memref<3x128x128xf32, #tpu.memory_space<vmem>>, vector<1x128x128xf32>
    %13 = vector.shape_cast %12 : vector<1x128x128xf32> to vector<128x128xf32>
    %cst_13 = arith.constant dense<0.000000e+00> : vector<8x128xf32>
    %14 = tpu.matmul %11, %13, %cst_13 {dimension_numbers = #tpu.dot_dimension_numbers<[1], [0], [0], [1], [0, 0, 1, 1], [], []>} : vector<8x128xf32>, vector<128x128xf32>, vector<8x128xf32> -> vector<8x128xf32>
    %15 = math.tanh %14 : vector<8x128xf32>
    %cst_14 = arith.constant dense<0.000000e+00> : vector<8x128xf32>
    %16 = tpu.matmul %0, %15, %cst_14 {dimension_numbers = #tpu.dot_dimension_numbers<[1], [0], [0], [1], [0, 0, 1, 1], [], []>} : vector<8x8xf32>, vector<8x128xf32>, vector<8x128xf32> -> vector<8x128xf32>
    %c0_15 = arith.constant 0 : index
    %c0_16 = arith.constant 0 : index
    %17 = vector.load %arg3[%c0_15, %c0_16] : memref<8x128xf32, #tpu.memory_space<vmem>>, vector<8x128xf32>
    tpu.vector_store %arg3[%c0_15, %c0_16], %16 {strides = array<i32>} : memref<8x128xf32, #tpu.memory_space<vmem>>, vector<8x128xf32>,
    return
  }
}

</mosaic_0001>

<bundles_post_ra>
// kernel: igae_decoder_forward.1
= control target key start
LH: loop header
LB: loop body
LE: loop exit
PB: predicated region body
PF: predicated region fallthrough
CT: control target
= control target key end

     0   :  { %8 = vsyncpa [#allocation3], 0  ;;  %s941_s0 = inlined_call_operand.vmem [shape: f32[8,128], index: 0, kind: input, shape index: {}]   ;;  %s942_s1 = inlined_call_operand.vmem [shape: f32[8,8], index: 1, kind: input, shape index: {}]   ;;  %s943_s2 = inlined_call_operand.hbm [shape: f32[3,128,128], index: 2, kind: input, shape index: {}]   ;;  %s944_s3 = inlined_call_operand.hbm [shape: f32[8,128], index: 3, kind: output, shape index: {}]  }
   0x1   :  { %9 = vsyncpa [#allocation4], 0  ;;  %s837_s12 = smov [#allocation2]   ;;  %s789_s16 = scalar_lea.hbm %s943_s2, 6144 }
   0x2   :  { %s19_s13 = sshll.u32 %s837_s12, 4  ;;  %p790_p0 = scmp.ne.s32.totalorder %s943_s2, %s789_s16  ;;  %s20_s13 = int_to_ptr.vmem [resolvable:$true] %s19_s13 }
   0x3   :  { %p793_p1 = scmp.lt.u32.totalorder %s789_s16, %s943_s2 }
   0x5   :  { %p795_p2 = pnand %p793_p1, %p790_p0 }
   0x7   :  { %798 = shalt.err (!%p795_p2)
}
   0x8   :  { %s799_s21 = scalar_lea.vmem %s20_s13, 6144  ;;  %p804_p4 = scmp.lt.s32.totalorder %s20_s13, %s20_s13 }
   0x9   :  { %p800_p3 = scmp.ne.s32.totalorder %s20_s13, %s799_s21  ;;  %p805_p5 = scmp.lt.s32.totalorder %s799_s21, %s799_s21 }
   0xb   :  { %p806_p6 = por %p805_p5, %p804_p4 }
   0xd   :  { %p807_p7 = pnand %p806_p6, %p800_p3 }
   0xf   :  { %810 = shalt.err (!%p807_p7)
}
  0x10   :  { %s838_s22 = smov 128   ;;  %s839_s23 = smov 8  }
  0x11   :  { %25 = dma.hbm_to_vmem [thread:$0]  %s943_s2, 6144, %s20_s13, [#allocation3], %s838_s22, %s838_s22, %s839_s23  }
  0x12   :  { %833 = dma.done.wait [#allocation3], 6144  }
  0x13   :  { %834 = vsyncadd [#allocation3], 4294961152  ;;  %v840_v0 = vmov 0.0|0.0   ;;  %vm841_vm0 = vmmov 0   ;;  %v842_v1 = vmov 0.0   ;;  %v31_v2 = vld [vmem:[#allocation2] sm:$0xff] }
  0x14   :  { %704 = vmatprep.subr.bf16.mxu0 %v840_v0  ;;  %616 = vmatprep.mubr.msk.f32.mxu0 %vm841_vm0, %v842_v1  ;;  %v32_v3 = vld [vmem:[#allocation2 + $0x8] sm:$0xff]  ;;  %v33_v4 = vld [vmem:[#allocation2 + $0x10] sm:$0xff]  ;;  %v34_v6 = vld [vmem:[#allocation2 + $0x18] sm:$0xff]  ;;  %vm118_vm1 = vcmask 64512  }
  0x15   :  { %728 = vmatprep.subr.bf16.mxu1 %v840_v0  ;;  %656 = vmatprep.mubr.msk.f32.mxu1 %vm841_vm0, %v842_v1  ;;  %v705_v5 = vpack.c.bf16 %v32_v3, %v31_v2  ;;  %v708_v7 = vpack.c.bf16 %v34_v6, %v33_v4  ;;  %v35_v8 = vld [vmem:[#allocation2 + $0x20] sm:$0xff]  ;;  %v36_v9 = vld [vmem:[#allocation2 + $0x28] sm:$0xff]  ;;  %v37_v11 = vld [vmem:[#allocation2 + $0x30] sm:$0xff] }
  0x16   :  { %v711_v10 = vpack.c.bf16 %v36_v9, %v35_v8  ;;  %v38_v12 = vld [vmem:[#allocation2 + $0x38] sm:$0xff]  ;;  %v39_v14 = vld [vmem:[#allocation2 + $0x40] sm:$0xff]  ;;  %v40_v15 = vld [vmem:[#allocation2 + $0x48] sm:$0xff] }
  0x17   :  { %706 = vmatpush3.bf16.msra.mxu0 %v705_v5  ;;  %v714_v13 = vpack.c.bf16 %v38_v12, %v37_v11  ;;  %v717_v16 = vpack.c.bf16 %v40_v15, %v39_v14  ;;  %v41_v17 = vld [vmem:[#allocation2 + $0x50] sm:$0xff]  ;;  %v42_v18 = vld [vmem:[#allocation2 + $0x58] sm:$0xff]  ;;  %v43_v20 = vld [vmem:[#allocation2 + $0x60] sm:$0xff] }
  0x18   :  { %707 = vmatprep.subr.bf16.mxu0 %v840_v0  ;;  %v720_v19 = vpack.c.bf16 %v42_v18, %v41_v17  ;;  %v44_v21 = vld [vmem:[#allocation2 + $0x68] sm:$0xff]  ;;  %v45_v23 = vld [vmem:[#allocation2 + $0x70] sm:$0xff]  ;;  %v46_v24 = vld [vmem:[#allocation2 + $0x78] sm:$0xff] }
  0x19   :  { %v723_v22 = vpack.c.bf16 %v44_v21, %v43_v20  ;;  %v726_v25 = vpack.c.bf16 %v46_v24, %v45_v23  ;;  %v30_v26 = vld [vmem:[%s941_s0] sm:$0xff]  ;;  %v193_v27 = vld [vmem:[#allocation2 + $0x80] sm:$0xff]  ;;  %v194_v28 = vld [vmem:[#allocation2 + $0x88] sm:$0xff] }
  0x1a   :  { %v195_v29 = vld [vmem:[#allocation2 + $0x90] sm:$0xff]  ;;  %v729_v30 = vpack.c.bf16 %v194_v28, %v193_v27  ;;  %v196_v31 = vld [vmem:[#allocation2 + $0x98] sm:$0xff]  ;;  %v197_v33 = vld [vmem:[#allocation2 + $0xa0] sm:$0xff] }
  0x1b   :  { %709 = vmatpush3.bf16.msra.mxu0 %v708_v7  ;;  %v732_v32 = vpack.c.bf16 %v196_v31, %v195_v29  ;;  %v198_v34 = vld [vmem:[#allocation2 + $0xa8] sm:$0xff]  ;;  %v199_v36 = vld [vmem:[#allocation2 + $0xb0] sm:$0xff]  ;;  %v200_v37 = vld [vmem:[#allocation2 + $0xb8] sm:$0xff] }
  0x1c   :  { %710 = vmatprep.subr.bf16.mxu0 %v840_v0  ;;  %730 = vmatpush3.bf16.msra.mxu1 %v729_v30  ;;  %v735_v35 = vpack.c.bf16 %v198_v34, %v197_v33  ;;  %v738_v38 = vpack.c.bf16 %v200_v37, %v199_v36  ;;  %v201_v39 = vld [vmem:[#allocation2 + $0xc0] sm:$0xff]  ;;  %v202_v40 = vld [vmem:[#allocation2 + $0xc8] sm:$0xff]  ;;  %v203_v42 = vld [vmem:[#allocation2 + $0xd0] sm:$0xff] }
  0x1d   :  { %731 = vmatprep.subr.bf16.mxu1 %v840_v0  ;;  %v741_v41 = vpack.c.bf16 %v202_v40, %v201_v39  ;;  %v204_v43 = vld [vmem:[#allocation2 + $0xd8] sm:$0xff]  ;;  %v205_v45 = vld [vmem:[#allocation2 + $0xe0] sm:$0xff]  ;;  %v206_v46 = vld [vmem:[#allocation2 + $0xe8] sm:$0xff] }
  0x1e   :  { %v744_v44 = vpack.c.bf16 %v204_v43, %v203_v42  ;;  %v747_v47 = vpack.c.bf16 %v206_v46, %v205_v45  ;;  %v207_v48 = vld [vmem:[#allocation2 + $0xf0] sm:$0xff]  ;;  %v208_v49 = vld [vmem:[#allocation2 + $0xf8] sm:$0xff]  ;;  %v351_v57 = vld [vmem:[#allocation2 + $0x100] sm:$0xff] }
  0x1f   :  { %712 = vmatpush3.bf16.msra.mxu0 %v711_v10  ;;  %v750_v50 = vpack.c.bf16 %v208_v49, %v207_v48  ;;  %v906_v53 = vld [vmem:[%s942_s1] sm:$0xff]  ;;  %v352_v58 = vld [vmem:[#allocation2 + $0x108] sm:$0xff]  ;;  %v354_v61 = vld [vmem:[#allocation2 + $0x118] sm:$0xff]  ;;  %s843_s1 = smov [#allocation5]  }
  0x20   :  { %713 = vmatprep.subr.bf16.mxu0 %v840_v0  ;;  %733 = vmatpush3.bf16.msra.mxu1 %v732_v32  ;;  %v353_v59 = vld [vmem:[#allocation2 + $0x110] sm:$0xff]  ;;  %v753_v60 = vpack.c.bf16 %v352_v58, %v351_v57  ;;  %v355_v63 = vld [vmem:[#allocation2 + $0x120] sm:$0xff]  ;;  %v356_v2 = vld [vmem:[#allocation2 + $0x128] sm:$0xff]  ;;  %s515_s28 = sshll.u32 %s843_s1, 4  ;;  %s516_s28 = int_to_ptr.vmem [resolvable:$true] %s515_s28 }
  0x21   :  { %734 = vmatprep.subr.bf16.mxu1 %v840_v0  ;;  %v756_v62 = vpack.c.bf16 %v354_v61, %v353_v59  ;;  %v759_v3 = vpack.c.bf16 %v356_v2, %v355_v63  ;;  %v357_v4 = vld [vmem:[#allocation2 + $0x130] sm:$0xff]  ;;  %v358_v5 = vld [vmem:[#allocation2 + $0x138] sm:$0xff]  ;;  %v359_v7 = vld [vmem:[#allocation2 + $0x140] sm:$0xff]  ;;  %s811_s29 = scalar_lea.vmem %s516_s28, 128  ;;  %p816_p9 = scmp.lt.s32.totalorder %s516_s28, %s516_s28 }
  0x22   :  { %v762_v6 = vpack.c.bf16 %v358_v5, %v357_v4  ;;  %v360_v8 = vld [vmem:[#allocation2 + $0x148] sm:$0xff]  ;;  %v361_v10 = vld [vmem:[#allocation2 + $0x150] sm:$0xff]  ;;  %v362_v11 = vld [vmem:[#allocation2 + $0x158] sm:$0xff]  ;;  %p812_p8 = scmp.ne.s32.totalorder %s516_s28, %s811_s29  ;;  %p817_p10 = scmp.lt.s32.totalorder %s811_s29, %s811_s29 }
  0x23   :  { %715 = vmatpush3.bf16.msra.mxu0 %v714_v13  ;;  %v765_v9 = vpack.c.bf16 %v360_v8, %v359_v7  ;;  %v768_v12 = vpack.c.bf16 %v362_v11, %v361_v10  ;;  %v363_v13 = vld [vmem:[#allocation2 + $0x160] sm:$0xff]  ;;  %v364_v14 = vld [vmem:[#allocation2 + $0x168] sm:$0xff]  ;;  %v366_v17 = vld [vmem:[#allocation2 + $0x178] sm:$0xff] }
  0x24   :  { %716 = vmatprep.subr.bf16.mxu0 %v840_v0  ;;  %736 = vmatpush3.bf16.msra.mxu1 %v735_v35  ;;  %v771_v15 = vpack.c.bf16 %v364_v14, %v363_v13  ;;  %p818_p11 = por %p817_p10, %p816_p9 }
  0x25   :  { %737 = vmatprep.subr.bf16.mxu1 %v840_v0 }
  0x26   :  { %p819_p12 = pnand %p818_p11, %p812_p8 }
  0x27   :  { %718 = vmatpush3.bf16.msra.mxu0 %v717_v16  ;;  %v365_v16 = vld [vmem:[#allocation2 + $0x170] sm:$0xff] }
  0x28   :  { %719 = vmatprep.subr.bf16.mxu0 %v840_v0  ;;  %739 = vmatpush3.bf16.msra.mxu1 %v738_v38  ;;  %v774_v18 = vpack.c.bf16 %v366_v17, %v365_v16 }
  0x29   :  { %740 = vmatprep.subr.bf16.mxu1 %v840_v0 }
  0x2b   :  { %721 = vmatpush3.bf16.msra.mxu0 %v720_v19 }
  0x2c   :  { %722 = vmatprep.subr.bf16.mxu0 %v840_v0  ;;  %742 = vmatpush3.bf16.msra.mxu1 %v741_v41 }
  0x2d   :  { %743 = vmatprep.subr.bf16.mxu1 %v840_v0 }
  0x2f   :  { %724 = vmatpush3.bf16.msra.mxu0 %v723_v22 }
  0x30   :  { %725 = vmatprep.subr.bf16.mxu0 %v840_v0  ;;  %745 = vmatpush3.bf16.msra.mxu1 %v744_v44 }
  0x31   :  { %746 = vmatprep.subr.bf16.mxu1 %v840_v0 }
  0x33   :  { %727 = vmatpush3.bf16.msra.mxu0 %v726_v25 }
  0x34   :  { %619 = vmatprep.subr.mxu0 %v842_v1  ;;  %748 = vmatpush3.bf16.msra.mxu1 %v747_v47 }
  0x35   :  { %749 = vmatprep.subr.bf16.mxu1 %v840_v0 }
  0x36   :  { %617 = vmatmul.mubr.f32.vlgmr.msra.gmra.mrb[0].mxu0 %v30_v26 }
  0x37   :  { %621 = vmatprep.mubr.msk.f32.mxu0 %vm841_vm0, %v842_v1 }
  0x38   :  { %751 = vmatpush3.bf16.msra.mxu1 %v750_v50 }
  0x39   :  { %752 = vmatprep.subr.bf16.mxu1 %v840_v0 }
 0x109   :  { %v113_v51 = vpop.f32.mrb[0].mxu0 }
 0x10a   :  { %783 = vtanh.f32 %v113_v51  ;;  %v618_v52 = vpop.f32.mrb[1].mxu0 }
 0x114   :  { %v784_v54 = vpop.eup %783 }
 0x115   :  { %620 = vmatpush3.msra.mxu0 %v784_v54 }
 0x116   :  { %622 = vmatmul.mubr.msk.f32.vlgmr.msra.gmra.mrb[2].mxu0 %vm118_vm1, %v906_v53  ;;  %659 = vmatprep.subr.mxu0 %v842_v1 }
 0x117   :  { %661 = vmatprep.mubr.msk.f32.mxu0 %vm841_vm0, %v842_v1 }
 0x1e9   :  { %v188_v55 = vpop.f32.mrb[2].mxu0 }
 0x1ea   :  { %v623_v56 = vpop.f32.mrb[3].mxu0  ;;  %657 = vmatmul.mubr.f32.vlgmr.msra.gmra.mrb[0].mxu1 %v188_v55 }
 0x1eb   :  { %696 = vmatprep.mubr.msk.f32.mxu1 %vm841_vm0, %v842_v1  ;;  %754 = vmatpush3.bf16.msra.mxu1 %v753_v60 }
 0x1ec   :  { %755 = vmatprep.subr.bf16.mxu1 %v840_v0 }
 0x1ef   :  { %757 = vmatpush3.bf16.msra.mxu1 %v756_v62 }
 0x1f0   :  { %758 = vmatprep.subr.bf16.mxu1 %v840_v0 }
 0x1f3   :  { %760 = vmatpush3.bf16.msra.mxu1 %v759_v3 }
 0x1f4   :  { %761 = vmatprep.subr.bf16.mxu1 %v840_v0 }
 0x1f7   :  { %763 = vmatpush3.bf16.msra.mxu1 %v762_v6 }
 0x1f8   :  { %764 = vmatprep.subr.bf16.mxu1 %v840_v0 }
 0x1fb   :  { %766 = vmatpush3.bf16.msra.mxu1 %v765_v9 }
 0x1fc   :  { %767 = vmatprep.subr.bf16.mxu1 %v840_v0 }
 0x1ff   :  { %769 = vmatpush3.bf16.msra.mxu1 %v768_v12 }
 0x200   :  { %770 = vmatprep.subr.bf16.mxu1 %v840_v0 }
 0x203   :  { %772 = vmatpush3.bf16.msra.mxu1 %v771_v15 }
 0x204   :  { %773 = vmatprep.subr.bf16.mxu1 %v840_v0 }
 0x207   :  { %775 = vmatpush3.bf16.msra.mxu1 %v774_v18 }
 0x2bd   :  { %v275_v19 = vpop.f32.mrb[0].mxu1 }
 0x2be   :  { %785 = vtanh.f32 %v275_v19  ;;  %v658_v20 = vpop.f32.mrb[1].mxu1 }
 0x2c8   :  { %v786_v21 = vpop.eup %785 }
 0x2c9   :  { %660 = vmatpush3.msra.mxu0 %v786_v21 }
 0x2ca   :  { %662 = vmatmul.mubr.msk.f32.vlgmr.msra.gmra.mrb[4].mxu0 %vm118_vm1, %v906_v53  ;;  %699 = vmatprep.subr.mxu0 %v842_v1 }
 0x2cb   :  { %701 = vmatprep.mubr.msk.f32.mxu0 %vm841_vm0, %v842_v1 }
 0x39d   :  { %v346_v22 = vpop.f32.mrb[4].mxu0 }
 0x39e   :  { %v663_v23 = vpop.f32.mrb[5].mxu0  ;;  %697 = vmatmul.mubr.f32.vlgmr.msra.gmra.mrb[2].mxu1 %v346_v22 }
 0x471   :  { %v433_v24 = vpop.f32.mrb[2].mxu1 }
 0x472   :  { %787 = vtanh.f32 %v433_v24  ;;  %v698_v0 = vpop.f32.mrb[3].mxu1 }
 0x47c   :  { %v788_v25 = vpop.eup %787 }
 0x47d   :  { %700 = vmatpush3.msra.mxu0 %v788_v25 }
 0x47e   :  { %702 = vmatmul.mubr.msk.f32.vlgmr.msra.gmra.mrb[6].mxu0 %vm118_vm1, %v906_v53 }
 0x551   :  { %v504_v26 = vpop.f32.mrb[6].mxu0 }
 0x552   :  { %508 = vst [vmem:[#allocation5] sm:$0xff] %v504_v26  ;;  %v703_v27 = vpop.f32.mrb[7].mxu0 }
 0x553   :  { %822 = shalt.err (!%p819_p12)
}
 0x554   :  { %s823_s5 = scalar_lea.hbm %s944_s3, 128 }
 0x555   :  { %p824_p13 = scmp.ne.s32.totalorder %s944_s3, %s823_s5  ;;  %p827_p0 = scmp.lt.u32.totalorder %s823_s5, %s944_s3 }
 0x557   :  { %p829_p1 = pnand %p827_p0, %p824_p13 }
 0x559   :  { %832 = shalt.err (!%p829_p1)
}
 0x55a   :  { %518 = dma.vmem_to_hbm [thread:$0]  %s516_s28, 128, %s944_s3, [#allocation4]  }
 0x55b   :  { %835 = dma.done.wait [#allocation4], 128  }
 0x55c   :  { %836 = vsyncadd [#allocation4], 4294967168 }
 0x55d   :  { %522 = vsyncpa [#allocation3], 1 }
 0x55e   :  { %523 = vsyncpa [#allocation4], 1 }

</bundles_post_ra>
